<compile_context>
chip_gen: v7x
topology: tpu7x:2x2x1
jax: 0.10.0
libtpu: 0.0.40
codegen_flags: <defaults>
</compile_context>

<pallas_src>
import jax
import jax.numpy as jnp
from jax.experimental import pallas as pl
from jax.experimental.pallas import tpu as pltpu


_LANE = 128
_TARGET_BLOCK_BYTES = 2 * 1024 * 1024   # ~2 MiB blocks: near HBM roofline, fits scoped VMEM everywhere
_VMEM_LIMIT_FLOOR = 32 * 1024 * 1024
_VMEM_LIMIT_CEIL = 48 * 1024 * 1024     # stay well under v7x 64 MiB physical VMEM


def _sublane(dtype) -> int:
    return {4: 8, 2: 16, 1: 32}.get(jnp.dtype(dtype).itemsize, 8)


def _pick_tile(extent: int, multiple: int, max_tile: int) -> int:
    """Largest t <= max_tile with t % multiple == 0 and extent % t == 0; else full extent."""
    if extent <= max_tile:
        return extent
    t = (max_tile // multiple) * multiple
    while t >= multiple:
        if extent % t == 0:
            return t
        t -= multiple
    return extent  # no clean divisor: fall back to a single full-extent tile


def _vmem_limit(block_bytes: int) -> int:
    # x-in, pe-in, out each double-buffered (~6x block) plus headroom.
    return int(min(_VMEM_LIMIT_CEIL, max(_VMEM_LIMIT_FLOOR, 8 * block_bytes)))


def _add_pe_kernel(x_ref, pe_ref, o_ref):
    # Plain elementwise add; when pe_ref has a leading size-1 dim it broadcasts.
    o_ref[...] = x_ref[...] + pe_ref[...]


def _add_pe_tiled_seq(x: jax.Array, pe_table: jax.Array) -> jax.Array:
    """H is a multiple of 128: tile the sequence axis, keep batch as the inner grid axis."""
    B, T, H = x.shape
    itemsize = jnp.dtype(x.dtype).itemsize
    sub = _sublane(x.dtype)
    max_rows = max(sub, _TARGET_BLOCK_BYTES // (H * itemsize))
    tT = _pick_tile(T, sub, max_rows)
    block_bytes = tT * H * itemsize

    grid = (T // tT, B)  # batch innermost -> pe tile index constant across consecutive steps (reused, not re-DMA'd)
    return pl.pallas_call(
        _add_pe_kernel,
        out_shape=jax.ShapeDtypeStruct((B, T, H), x.dtype),
        grid_spec=pltpu.PrefetchScalarGridSpec(
            num_scalar_prefetch=0,
            grid=grid,
            in_specs=[
                pl.BlockSpec((pl.Squeezed(), tT, H), lambda t, b: (b, t, 0)),
                # Index rows of the full embedding table directly: no wrapper-side slice copy.
                pl.BlockSpec((tT, H), lambda t, b: (t, 0)),
            ],
            out_specs=pl.BlockSpec((pl.Squeezed(), tT, H), lambda t, b: (b, t, 0)),
        ),
        compiler_params=pltpu.CompilerParams(
            dimension_semantics=("parallel", "parallel"),
            vmem_limit_bytes=_vmem_limit(block_bytes),
        ),
    )(x, pe_table)


def _add_pe_flat(x: jax.Array, pe_table: jax.Array) -> jax.Array:
    """H not lane-aligned: fold (T, H) into the lane axis for lane-dense (unmasked) stores."""
    B, T, H = x.shape
    C = T * H
    itemsize = jnp.dtype(x.dtype).itemsize
    sub = _sublane(x.dtype)

    x_flat = x.reshape(B, C)
    # Folding (T, H) -> (T*H,) needs the contiguous T rows, so the slice happens here (tiny vs B*T*H traffic).
    pe_flat = pe_table[:T].reshape(1, C)

    tB = B if B <= 256 else _pick_tile(B, sub, 256)
    max_cols = max(_LANE, _TARGET_BLOCK_BYTES // (tB * itemsize))
    tC = _pick_tile(C, _LANE, max_cols) if C % _LANE == 0 else C
    block_bytes = tB * tC * itemsize

    grid = (C // tC, B // tB)  # batch tiles innermost -> pe column tile reused across them
    out_flat = pl.pallas_call(
        _add_pe_kernel,
        out_shape=jax.ShapeDtypeStruct((B, C), x.dtype),
        grid_spec=pltpu.PrefetchScalarGridSpec(
            num_scalar_prefetch=0,
            grid=grid,
            in_specs=[
                pl.BlockSpec((tB, tC), lambda c, b: (b, c)),
                pl.BlockSpec((1, tC), lambda c, b: (0, c)),
            ],
            out_specs=pl.BlockSpec((tB, tC), lambda c, b: (b, c)),
        ),
        compiler_params=pltpu.CompilerParams(
            dimension_semantics=("parallel", "parallel"),
            vmem_limit_bytes=_vmem_limit(block_bytes),
        ),
    )(x_flat, pe_flat)
    return out_flat.reshape(B, T, H)


def learned_positional_encoding(x: jax.Array, pe_table: jax.Array) -> jax.Array:
    """x: (B, T, H); pe_table: (max_len, H). Returns x + pe_table[:T] broadcast over B."""
    B, T, H = x.shape
    max_len = pe_table.shape[0]
    if T > max_len:
        raise ValueError(f"sequence length {T} exceeds positional table max_len {max_len}")
    # Cast once in the wrapper: halves pe DMA bytes for bf16 activations and keeps the
    # in-kernel add/store dtype identical to the output ref.
    pe_table = pe_table.astype(x.dtype)

    if H % _LANE == 0:
        return _add_pe_tiled_seq(x, pe_table)
    return _add_pe_flat(x, pe_table)


class LearnedPositionalEncodingPallas:
    """Mirror of the PyTorch module. dropout=None => identity after the add (eval semantics)."""

    def __init__(self, num_hiddens: int, dropout=None, max_len: int = 1000, key=None):
        self.num_hiddens = num_hiddens
        self.dropout = dropout  # TODO(synk): training-mode dropout not implemented (module default is None).
        if key is None:
            key = jax.random.PRNGKey(0)
        # nn.Embedding default init: N(0, 1)
        self.pe_weight = jax.random.normal(key, (max_len, num_hiddens), dtype=jnp.float32)

    def __call__(self, x: jax.Array) -> jax.Array:
        return learned_positional_encoding(x, self.pe_weight)


if __name__ == "__main__":
    key = jax.random.PRNGKey(0)
    kx1, kpe1, kx2, kpe2 = jax.random.split(key, 4)

    # 1) Small demo shape (H=32 -> exercises the lane-folding path).
    B, T, H = 2, 8, 32
    x = jax.random.normal(kx1, (B, T, H), dtype=jnp.float32)
    mod = LearnedPositionalEncodingPallas(num_hiddens=H, dropout=None, max_len=1000, key=kpe1)
    out = jax.block_until_ready(mod(x))
    ref = x + mod.pe_weight[:T, :].astype(x.dtype)[None, :, :]
    assert out.shape == (B, T, H)
    assert jnp.allclose(out, ref, atol=1e-6), "flat-path Pallas output does not match reference"

    # 2) Lane-aligned shape in bf16 (exercises the sequence-tiled path and the dtype cast).
    B2, T2, H2 = 2, 16, 128
    x2 = jax.random.normal(kx2, (B2, T2, H2), dtype=jnp.bfloat16)
    mod2 = LearnedPositionalEncodingPallas(num_hiddens=H2, dropout=None, max_len=64, key=kpe2)
    out2 = jax.block_until_ready(mod2(x2))
    ref2 = x2 + mod2.pe_weight[:T2, :].astype(x2.dtype)[None, :, :]
    assert out2.shape == (B2, T2, H2)
    assert jnp.allclose(out2.astype(jnp.float32), ref2.astype(jnp.float32), atol=1e-2), \
        "tiled-path Pallas output does not match reference"

    print("KERNEL_OK")
</pallas_src>

<mosaic_0001>
module attributes {stable_mosaic.version = 11 : i64} {
  func.func @_add_pe_kernel(%arg0: i32, %arg1: i32, %arg2: memref<2x256xf32, #tpu.memory_space<vmem>>, %arg3: memref<1x256xf32, #tpu.memory_space<vmem>>, %arg4: memref<2x256xf32, #tpu.memory_space<vmem>>) attributes {dimension_semantics = [#tpu.dimension_semantics<parallel>, #tpu.dimension_semantics<parallel>], iteration_bounds = array<i64: 1, 1>, scalar_prefetch = 0 : i64, scratch_operands = 0 : i64, tpu.core_type = #tpu.core_type<tc>, window_params = [{transform_indices = @transform_0, window_bounds = array<i64: 2, 256>}, {transform_indices = @transform_1, window_bounds = array<i64: 1, 256>}, {transform_indices = @transform_2, window_bounds = array<i64: 2, 256>}]} {
    %c0 = arith.constant 0 : index
    %c0_0 = arith.constant 0 : index
    %0 = vector.load %arg2[%c0, %c0_0] : memref<2x256xf32, #tpu.memory_space<vmem>>, vector<2x256xf32>
    %c0_1 = arith.constant 0 : index
    %c0_2 = arith.constant 0 : index
    %1 = vector.load %arg3[%c0_1, %c0_2] : memref<1x256xf32, #tpu.memory_space<vmem>>, vector<1x256xf32>
    %2 = vector.broadcast %1 : vector<1x256xf32> to vector<2x256xf32>
    %3 = arith.addf %0, %2 : vector<2x256xf32>
    %c0_3 = arith.constant 0 : index
    %c0_4 = arith.constant 0 : index
    %4 = vector.load %arg4[%c0_3, %c0_4] : memref<2x256xf32, #tpu.memory_space<vmem>>, vector<2x256xf32>
    tpu.vector_store %arg4[%c0_3, %c0_4], %3 {strides = array<i32>} : memref<2x256xf32, #tpu.memory_space<vmem>>, vector<2x256xf32>,
    return
  }
  func.func @transform_0(%arg0: i32, %arg1: i32) -> (i32, i32) {
    %c0_i32 = arith.constant 0 : i32
    return %arg1, %arg0 : i32, i32
  }
  func.func @transform_1(%arg0: i32, %arg1: i32) -> (i32, i32) {
    %c0_i32 = arith.constant 0 : i32
    %c0_i32_0 = arith.constant 0 : i32
    return %c0_i32, %arg0 : i32, i32
  }
  func.func @transform_2(%arg0: i32, %arg1: i32) -> (i32, i32) {
    %c0_i32 = arith.constant 0 : i32
    return %arg1, %arg0 : i32, i32
  }
}

</mosaic_0001>

<bundles_post_ra>
// kernel: tpu_custom_call.1
= control target key start
LH: loop header
LB: loop body
LE: loop exit
PB: predicated region body
PF: predicated region fallthrough
CT: control target
= control target key end

     0   :  { %7 = vsyncpa [#allocation3], 0  ;;  %s157_s0 = inlined_call_operand.hbm [shape: f32[2,256], index: 0, kind: input, shape index: {}]   ;;  %s158_s1 = inlined_call_operand.vmem [shape: f32[1,256], index: 1, kind: input, shape index: {}]   ;;  %s159_s2 = inlined_call_operand.hbm [shape: f32[2,256], index: 2, kind: output, shape index: {}]  }
   0x1   :  { %8 = vsyncpa [#allocation4], 0  ;;  %s112_s9 = smov [#allocation2]   ;;  %s64_s13 = scalar_lea.hbm %s157_s0, 64 }
   0x2   :  { %s15_s10 = sshll.u32 %s112_s9, 4  ;;  %p65_p0 = scmp.ne.s32.totalorder %s157_s0, %s64_s13  ;;  %s16_s10 = int_to_ptr.vmem [resolvable:$true] %s15_s10 }
   0x3   :  { %p68_p1 = scmp.lt.u32.totalorder %s64_s13, %s157_s0 }
   0x5   :  { %p70_p2 = pnand %p68_p1, %p65_p0 }
   0x7   :  { %73 = shalt.err (!%p70_p2)
}
   0x8   :  { %s74_s18 = scalar_lea.vmem %s16_s10, 64  ;;  %p79_p4 = scmp.lt.s32.totalorder %s16_s10, %s16_s10 }
   0x9   :  { %p75_p3 = scmp.ne.s32.totalorder %s16_s10, %s74_s18  ;;  %p80_p5 = scmp.lt.s32.totalorder %s74_s18, %s74_s18 }
   0xb   :  { %p81_p6 = por %p80_p5, %p79_p4 }
   0xd   :  { %p82_p7 = pnand %p81_p6, %p75_p3 }
   0xf   :  { %85 = shalt.err (!%p82_p7)
}
  0x10   :  { %18 = dma.hbm_to_vmem [thread:$0]  %s157_s0, 64, %s16_s10, [#allocation3]  }
  0x11   :  { %108 = dma.done.wait [#allocation3], 64  }
  0x12   :  { %109 = vsyncadd [#allocation3], 4294967232  ;;  %v27_v0 = vlaneseq  ;;  %v113_v1 = vmov 1983009808   ;;  %v25_v7 = vld [vmem:[%s158_s1] sm:$0x3] }
  0x13   :  { %v37_v2 = vunpack.c.l.s4 %v113_v1  ;;  %v24_v12 = vld [vmem:[#allocation2] sm:$0xf]  ;;  %s114_s23 = smov [#allocation5]  }
  0x14   :  { %v28_v3 = vshrl.u32 %v27_v0, 7  ;;  %s52_s0 = sshll.u32 %s114_s23, 4  ;;  %s53_s0 = int_to_ptr.vmem [resolvable:$true] %s52_s0 }
  0x15   :  { %v38_v6 = vunpack.c.0.s8 %v37_v2  ;;  %s86_s24 = scalar_lea.vmem %s53_s0, 64  ;;  %p91_p9 = scmp.lt.s32.totalorder %s53_s0, %s53_s0 }
  0x16   :  { %v29_v4 = vsub.s32 0, %v28_v3  ;;  %v33_v5 = vsub.s32 1, %v28_v3  ;;  %p87_p8 = scmp.ne.s32.totalorder %s53_s0, %s86_s24  ;;  %p92_p10 = scmp.lt.s32.totalorder %s86_s24, %s86_s24 }
  0x17   :  { %v41_v10 = vsub.s32 %v38_v6, %v28_v3 }
  0x18   :  { %v30_v8 = vrot.slane %v25_v7, %v29_v4  ;;  %v34_v9 = vrot.slane %v25_v7, %v33_v5  ;;  %p93_p11 = por %p92_p10, %p91_p9 }
  0x1a   :  { %v35_v11 = vcombine.low %v30_v8, %v34_v9  ;;  %p94_p12 = pnand %p93_p11, %p87_p8 }
  0x1c   :  { %v42_v13 = vrot.slane %v35_v11, %v41_v10 }
  0x1e   :  { %v44_v14 = vadd.f32 %v42_v13, %v24_v12 }
  0x20   :  { %45 = vst [vmem:[#allocation5] sm:$0xf] %v44_v14 }
  0x21   :  { %97 = shalt.err (!%p94_p12)
}
  0x22   :  { %s98_s26 = scalar_lea.hbm %s159_s2, 64 }
  0x23   :  { %p99_p13 = scmp.ne.s32.totalorder %s159_s2, %s98_s26  ;;  %p102_p0 = scmp.lt.u32.totalorder %s98_s26, %s159_s2 }
  0x25   :  { %p104_p1 = pnand %p102_p0, %p99_p13 }
  0x27   :  { %107 = shalt.err (!%p104_p1)
}
  0x28   :  { %55 = dma.vmem_to_hbm [thread:$0]  %s53_s0, 64, %s159_s2, [#allocation4]  }
  0x29   :  { %110 = dma.done.wait [#allocation4], 64  }
  0x2a   :  { %111 = vsyncadd [#allocation4], 4294967232 }
  0x2b   :  { %59 = vsyncpa [#allocation3], 1 }
  0x2c   :  { %60 = vsyncpa [#allocation4], 1 }

</bundles_post_ra>
